<compile_context>
chip_gen: v6e
topology: v6e:2x2x1
jax: 0.10.0
libtpu: 0.0.40
codegen_flags: <defaults>
</compile_context>

<pallas_src>
import functools

import jax
import jax.numpy as jnp
from jax.experimental import pallas as pl
from jax.experimental.pallas import tpu as pltpu

BN_EPS = 1e-5


# ----------------------------- Pallas kernel -------------------------------
def _latent_generator_kernel(x_ref, w_ref, r_ref, out_ref, *, in_pad, h1, h2, L):
    """Fused mean+logstd mechanism network.

    x_ref:   [B, in_pad]                 (features zero-padded to in_pad)
    w_ref:   [in_pad + 2*h1 + 2*h2, W]   packed weights:
               rows [0, in_pad)               -> W1 fused       [in_pad, 2*h1]
               rows [in_pad, in_pad+2*h1)     -> W2 block-diag  [2*h1, 2*h2]
               rows [in_pad+2*h1, ...+2*h2)   -> Wout block-diag[2*h2, 2*L]
    r_ref:   [8, W] packed rows: b1, g1, beta1, b2, g2, beta2, b_out, zero-pad
    out_ref: [B, 2*L]  (mean | exp(logstd))
    """
    H1, H2, Lo = 2 * h1, 2 * h2, 2 * L

    x = x_ref[...]           # [B, in_pad]
    r = r_ref[...]           # [8, W]

    # Static ref slices -> zero-cost views.
    w1 = w_ref[0:in_pad, 0:H1]                        # [in_pad, 2*h1]
    w2 = w_ref[in_pad:in_pad + H1, 0:H2]              # [2*h1, 2*h2]
    wo = w_ref[in_pad + H1:in_pad + H1 + H2, 0:Lo]    # [2*h2, 2*L]

    def bn(h, gamma, beta):
        # BatchNorm1d, training-mode biased batch stats, single pass:
        # var = E[h^2] - E[h]^2 (one cross-sublane reduction pair).
        mu = jnp.mean(h, axis=0, keepdims=True)
        ms = jnp.mean(h * h, axis=0, keepdims=True)
        var = jnp.maximum(ms - mu * mu, 0.0)
        return (h - mu) * jax.lax.rsqrt(var + BN_EPS) * gamma + beta

    h = jnp.tanh(jnp.dot(x, w1, preferred_element_type=jnp.float32) + r[0:1, 0:H1])
    h = bn(h, r[1:2, 0:H1], r[2:3, 0:H1])
    h = jnp.tanh(jnp.dot(h, w2, preferred_element_type=jnp.float32) + r[3:4, 0:H2])
    h = bn(h, r[4:5, 0:H2], r[5:6, 0:H2])
    out = jnp.dot(h, wo, preferred_element_type=jnp.float32) + r[6:7, 0:Lo]

    # mean half passes through, logstd half gets exp; exp on all lanes is
    # EUP-slot work (cheap) and the lane-mask select avoids cross-lane shuffles.
    col = jax.lax.broadcasted_iota(jnp.int32, out.shape, 1)
    out_ref[...] = jnp.where(col < L, out, jnp.exp(out))


def _run_kernel(x_pad, w_slab, r_slab, *, in_pad, h1, h2, L):
    B = x_pad.shape[0]
    kernel = functools.partial(
        _latent_generator_kernel, in_pad=in_pad, h1=h1, h2=h2, L=L
    )
    vmem_spec = pl.BlockSpec(memory_space=pltpu.MemorySpace.VMEM)
    out = pl.pallas_call(
        kernel,
        out_shape=jax.ShapeDtypeStruct((B, 2 * L), jnp.float32),
        in_specs=[vmem_spec, vmem_spec, vmem_spec],
        out_specs=vmem_spec,
    )(x_pad, w_slab, r_slab)
    return out[:, :L], out[:, L:]


# ------------------------------- glue (JAX) --------------------------------
def to_one_hot(y, n_dims):
    """Matches the torch helper: long-cast (truncate) then one-hot."""
    return jax.nn.one_hot(y.astype(jnp.int32), n_dims, dtype=jnp.float32)


def preprocess(x, variable_dict):
    """NaN masking + per-variable one-hot / passthrough concatenation."""
    x_missing = jnp.isnan(x)
    x = jnp.where(x_missing, jnp.zeros_like(x), x)
    pieces = [x_missing.astype(jnp.float32)]
    for v in variable_dict.keys():
        col = x[:, variable_dict[v]["id"]]
        if variable_dict[v]["type"] == "categorical":
            col_tx = to_one_hot(col, variable_dict[v]["dim"])
        else:
            col_tx = col[:, None]
        pieces.append(col_tx.astype(jnp.float32))
    return jnp.concatenate(pieces, axis=1)


def init_mechanism_params(key, input_dim, hidden_dims, output_dim):
    """Synthetic init (Linear weights/biases ~ N(0, 0.1), BN gamma=1, beta=0)."""
    assert len(hidden_dims) == 2, "kernel is specialized for 2 hidden layers"
    h1, h2 = hidden_dims
    ks = jax.random.split(key, 6)
    w1 = 0.1 * jax.random.normal(ks[0], (input_dim, h1), jnp.float32)
    b1 = 0.1 * jax.random.normal(ks[1], (h1,), jnp.float32)
    g1 = jnp.ones((h1,), jnp.float32)
    be1 = jnp.zeros((h1,), jnp.float32)
    w2 = 0.1 * jax.random.normal(ks[2], (h1, h2), jnp.float32)
    b2 = 0.1 * jax.random.normal(ks[3], (h2,), jnp.float32)
    g2 = jnp.ones((h2,), jnp.float32)
    be2 = jnp.zeros((h2,), jnp.float32)
    wo = 0.1 * jax.random.normal(ks[4], (h2, output_dim), jnp.float32)
    bo = 0.1 * jax.random.normal(ks[5], (output_dim,), jnp.float32)
    return (w1, b1, g1, be1, w2, b2, g2, be2, wo, bo)


def pack_fused_params(mean_params, logstd_params, in_dim, h1, h2, L):
    """Fuse the two mechanisms (concat / block-diag) and pack into two slabs."""
    (mw1, mb1, mg1, mbe1, mw2, mb2, mg2, mbe2, mwo, mbo) = mean_params
    (sw1, sb1, sg1, sbe1, sw2, sb2, sg2, sbe2, swo, sbo) = logstd_params

    H1, H2, Lo = 2 * h1, 2 * h2, 2 * L
    in_pad = 8 * ((in_dim + 7) // 8)
    W = max(H1, H2, Lo)  # slab lane width (64 at default sizes)

    # Layer-1 weights: concat on output features. Zero rows pad in_dim -> in_pad.
    w1f = jnp.zeros((in_pad, W), jnp.float32)
    w1f = w1f.at[:in_dim, :h1].set(mw1).at[:in_dim, h1:H1].set(sw1)

    # Layer-2 / output weights: block diagonal so the halves stay independent.
    w2f = jnp.zeros((H1, W), jnp.float32)
    w2f = w2f.at[:h1, :h2].set(mw2).at[h1:H1, h2:H2].set(sw2)

    wof = jnp.zeros((H2, W), jnp.float32)
    wof = wof.at[:h2, :L].set(mwo).at[h2:H2, L:Lo].set(swo)

    w_slab = jnp.concatenate([w1f, w2f, wof], axis=0)  # [in_pad + 2*h1 + 2*h2, W]

    def row(m, s, width):
        r = jnp.zeros((W,), jnp.float32)
        return r.at[: width // 2].set(m).at[width // 2: width].set(s)

    r_slab = jnp.stack(
        [
            row(mb1, sb1, H1), row(mg1, sg1, H1), row(mbe1, sbe1, H1),
            row(mb2, sb2, H2), row(mg2, sg2, H2), row(mbe2, sbe2, H2),
            row(mbo, sbo, Lo), jnp.zeros((W,), jnp.float32),
        ],
        axis=0,
    )  # [8, W]

    return w_slab, r_slab, in_pad


class LatentGeneratorPallas:
    def __init__(self, num_latents, x_dim, x_one_hot_dim, variable_dict, options, key):
        self.num_latents = num_latents
        self.variable_dict = variable_dict
        self.h1, self.h2 = options["hidden_dims"]
        self.in_dim = x_dim + x_one_hot_dim
        km, ks = jax.random.split(key)
        mean_params = init_mechanism_params(
            km, self.in_dim, options["hidden_dims"], num_latents
        )
        logstd_params = init_mechanism_params(
            ks, self.in_dim, options["hidden_dims"], num_latents
        )
        self.w_slab, self.r_slab, self.in_pad = pack_fused_params(
            mean_params, logstd_params, self.in_dim, self.h1, self.h2, num_latents
        )

    @functools.partial(jax.jit, static_argnums=0)
    def __call__(self, x):
        x_cat = preprocess(x, self.variable_dict)
        pad = self.in_pad - x_cat.shape[1]
        if pad:
            x_cat = jnp.concatenate(
                [x_cat, jnp.zeros((x_cat.shape[0], pad), jnp.float32)], axis=1
            )
        return _run_kernel(
            x_cat,
            self.w_slab,
            self.r_slab,
            in_pad=self.in_pad,
            h1=self.h1,
            h2=self.h2,
            L=self.num_latents,
        )


# --------------------------------- main -------------------------------------
if __name__ == "__main__":
    key = jax.random.PRNGKey(0)

    # Small, forward-consistent shapes.
    B = 8
    x_dim = 4
    variable_dict = {
        "v0": {"id": 0, "dim": 3, "type": "categorical"},
        "v1": {"id": 1, "dim": 1, "type": "continuous"},
        "v2": {"id": 2, "dim": 4, "type": "categorical"},
        "v3": {"id": 3, "dim": 1, "type": "continuous"},
    }
    x_one_hot_dim = 3 + 1 + 4 + 1  # = 9
    num_latents = 8
    options = {"hidden_dims": [32, 16]}

    k_x, k_cat0, k_cat2, k_params = jax.random.split(key, 4)

    # Deterministic input: categorical columns hold integer codes, continuous
    # columns are floats, and a couple of entries are NaN (missing).
    cat0 = jax.random.randint(k_cat0, (B,), 0, 3).astype(jnp.float32)
    cat2 = jax.random.randint(k_cat2, (B,), 0, 4).astype(jnp.float32)
    cont = jax.random.normal(k_x, (B, 2), jnp.float32)
    x = jnp.stack([cat0, cont[:, 0], cat2, cont[:, 1]], axis=1)
    x = x.at[1, 3].set(jnp.nan)
    x = x.at[5, 1].set(jnp.nan)

    gen = LatentGeneratorPallas(
        num_latents, x_dim, x_one_hot_dim, variable_dict, options, k_params
    )
    z_mean, z_std = gen(x)
    jax.block_until_ready((z_mean, z_std))

    assert z_mean.shape == (B, num_latents)
    assert z_std.shape == (B, num_latents)
    assert bool(jnp.all(jnp.isfinite(z_mean)))
    assert bool(jnp.all(z_std > 0.0))
    print("KERNEL_OK")
</pallas_src>

<mosaic_0001>
module attributes {stable_mosaic.version = 11 : i64} {
  func.func @_latent_generator_kernel(%arg0: memref<8x16xf32, #tpu.memory_space<vmem>>, %arg1: memref<112x64xf32, #tpu.memory_space<vmem>>, %arg2: memref<8x64xf32, #tpu.memory_space<vmem>>, %arg3: memref<8x16xf32, #tpu.memory_space<vmem>>) attributes {dimension_semantics = [], scalar_prefetch = 0 : i64, scratch_operands = 0 : i64, tpu.core_type = #tpu.core_type<tc>} {
    %c0 = arith.constant 0 : index
    %c0_0 = arith.constant 0 : index
    %0 = vector.load %arg0[%c0, %c0_0] : memref<8x16xf32, #tpu.memory_space<vmem>>, vector<8x16xf32>
    %c0_1 = arith.constant 0 : index
    %c0_2 = arith.constant 0 : index
    %1 = vector.load %arg2[%c0_1, %c0_2] : memref<8x64xf32, #tpu.memory_space<vmem>>, vector<8x64xf32>
    %c0_3 = arith.constant 0 : index
    %c0_4 = arith.constant 0 : index
    %2 = vector.load %arg1[%c0_3, %c0_4] : memref<112x64xf32, #tpu.memory_space<vmem>>, vector<16x64xf32>
    %c16 = arith.constant 16 : index
    %c0_5 = arith.constant 0 : index
    %3 = vector.load %arg1[%c16, %c0_5] : memref<112x64xf32, #tpu.memory_space<vmem>>, vector<64x32xf32>
    %c80 = arith.constant 80 : index
    %c0_6 = arith.constant 0 : index
    %4 = vector.load %arg1[%c80, %c0_6] : memref<112x64xf32, #tpu.memory_space<vmem>>, vector<32x16xf32>
    %cst = arith.constant dense<0.000000e+00> : vector<8x64xf32>
    %5 = tpu.matmul %0, %2, %cst {dimension_numbers = #tpu.dot_dimension_numbers<[1], [0], [0], [1], [0, 0, 1, 1], [], []>} : vector<8x16xf32>, vector<16x64xf32>, vector<8x64xf32> -> vector<8x64xf32>
    %6 = vector.extract_strided_slice %1 {offsets = [0, 0], sizes = [1, 64], strides = [1, 1]} : vector<8x64xf32> to vector<1x64xf32>
    %7 = vector.broadcast %6 : vector<1x64xf32> to vector<8x64xf32>
    %8 = arith.addf %5, %7 : vector<8x64xf32>
    %9 = math.tanh %8 : vector<8x64xf32>
    %10 = vector.extract_strided_slice %1 {offsets = [1, 0], sizes = [1, 64], strides = [1, 1]} : vector<8x64xf32> to vector<1x64xf32>
    %11 = vector.extract_strided_slice %1 {offsets = [2, 0], sizes = [1, 64], strides = [1, 1]} : vector<8x64xf32> to vector<1x64xf32>
    %cst_7 = arith.constant dense<0.000000e+00> : vector<64xf32>
    %12 = vector.multi_reduction <add>, %9, %cst_7 [0] : vector<8x64xf32> to vector<64xf32>
    %13 = vector.shape_cast %12 : vector<64xf32> to vector<1x64xf32>
    %cst_8 = arith.constant 8.000000e+00 : f32
    %14 = vector.broadcast %cst_8 : f32 to vector<1x64xf32>
    %15 = arith.divf %13, %14 : vector<1x64xf32>
    %16 = arith.mulf %9, %9 : vector<8x64xf32>
    %cst_9 = arith.constant dense<0.000000e+00> : vector<64xf32>
    %17 = vector.multi_reduction <add>, %16, %cst_9 [0] : vector<8x64xf32> to vector<64xf32>
    %18 = vector.shape_cast %17 : vector<64xf32> to vector<1x64xf32>
    %cst_10 = arith.constant 8.000000e+00 : f32
    %19 = vector.broadcast %cst_10 : f32 to vector<1x64xf32>
    %20 = arith.divf %18, %19 : vector<1x64xf32>
    %21 = arith.mulf %15, %15 : vector<1x64xf32>
    %22 = arith.subf %20, %21 : vector<1x64xf32>
    %cst_11 = arith.constant 0.000000e+00 : f32
    %23 = vector.broadcast %cst_11 : f32 to vector<1x64xf32>
    %24 = arith.maximumf %22, %23 : vector<1x64xf32>
    %25 = vector.broadcast %15 : vector<1x64xf32> to vector<8x64xf32>
    %26 = arith.subf %9, %25 : vector<8x64xf32>
    %cst_12 = arith.constant 9.99999974E-6 : f32
    %27 = vector.broadcast %cst_12 : f32 to vector<1x64xf32>
    %28 = arith.addf %24, %27 : vector<1x64xf32>
    %29 = math.rsqrt %28 : vector<1x64xf32>
    %30 = vector.broadcast %29 : vector<1x64xf32> to vector<8x64xf32>
    %31 = arith.mulf %26, %30 : vector<8x64xf32>
    %32 = vector.broadcast %10 : vector<1x64xf32> to vector<8x64xf32>
    %33 = arith.mulf %31, %32 : vector<8x64xf32>
    %34 = vector.broadcast %11 : vector<1x64xf32> to vector<8x64xf32>
    %35 = arith.addf %33, %34 : vector<8x64xf32>
    %cst_13 = arith.constant dense<0.000000e+00> : vector<8x32xf32>
    %36 = tpu.matmul %35, %3, %cst_13 {dimension_numbers = #tpu.dot_dimension_numbers<[1], [0], [0], [1], [0, 0, 1, 1], [], []>} : vector<8x64xf32>, vector<64x32xf32>, vector<8x32xf32> -> vector<8x32xf32>
    %37 = vector.extract_strided_slice %1 {offsets = [3, 0], sizes = [1, 32], strides = [1, 1]} : vector<8x64xf32> to vector<1x32xf32>
    %38 = vector.broadcast %37 : vector<1x32xf32> to vector<8x32xf32>
    %39 = arith.addf %36, %38 : vector<8x32xf32>
    %40 = math.tanh %39 : vector<8x32xf32>
    %41 = vector.extract_strided_slice %1 {offsets = [4, 0], sizes = [1, 32], strides = [1, 1]} : vector<8x64xf32> to vector<1x32xf32>
    %42 = vector.extract_strided_slice %1 {offsets = [5, 0], sizes = [1, 32], strides = [1, 1]} : vector<8x64xf32> to vector<1x32xf32>
    %cst_14 = arith.constant dense<0.000000e+00> : vector<32xf32>
    %43 = vector.multi_reduction <add>, %40, %cst_14 [0] : vector<8x32xf32> to vector<32xf32>
    %44 = vector.shape_cast %43 : vector<32xf32> to vector<1x32xf32>
    %cst_15 = arith.constant 8.000000e+00 : f32
    %45 = vector.broadcast %cst_15 : f32 to vector<1x32xf32>
    %46 = arith.divf %44, %45 : vector<1x32xf32>
    %47 = arith.mulf %40, %40 : vector<8x32xf32>
    %cst_16 = arith.constant dense<0.000000e+00> : vector<32xf32>
    %48 = vector.multi_reduction <add>, %47, %cst_16 [0] : vector<8x32xf32> to vector<32xf32>
    %49 = vector.shape_cast %48 : vector<32xf32> to vector<1x32xf32>
    %cst_17 = arith.constant 8.000000e+00 : f32
    %50 = vector.broadcast %cst_17 : f32 to vector<1x32xf32>
    %51 = arith.divf %49, %50 : vector<1x32xf32>
    %52 = arith.mulf %46, %46 : vector<1x32xf32>
    %53 = arith.subf %51, %52 : vector<1x32xf32>
    %cst_18 = arith.constant 0.000000e+00 : f32
    %54 = vector.broadcast %cst_18 : f32 to vector<1x32xf32>
    %55 = arith.maximumf %53, %54 : vector<1x32xf32>
    %56 = vector.broadcast %46 : vector<1x32xf32> to vector<8x32xf32>
    %57 = arith.subf %40, %56 : vector<8x32xf32>
    %cst_19 = arith.constant 9.99999974E-6 : f32
    %58 = vector.broadcast %cst_19 : f32 to vector<1x32xf32>
    %59 = arith.addf %55, %58 : vector<1x32xf32>
    %60 = math.rsqrt %59 : vector<1x32xf32>
    %61 = vector.broadcast %60 : vector<1x32xf32> to vector<8x32xf32>
    %62 = arith.mulf %57, %61 : vector<8x32xf32>
    %63 = vector.broadcast %41 : vector<1x32xf32> to vector<8x32xf32>
    %64 = arith.mulf %62, %63 : vector<8x32xf32>
    %65 = vector.broadcast %42 : vector<1x32xf32> to vector<8x32xf32>
    %66 = arith.addf %64, %65 : vector<8x32xf32>
    %cst_20 = arith.constant dense<0.000000e+00> : vector<8x16xf32>
    %67 = tpu.matmul %66, %4, %cst_20 {dimension_numbers = #tpu.dot_dimension_numbers<[1], [0], [0], [1], [0, 0, 1, 1], [], []>} : vector<8x32xf32>, vector<32x16xf32>, vector<8x16xf32> -> vector<8x16xf32>
    %68 = vector.extract_strided_slice %1 {offsets = [6, 0], sizes = [1, 16], strides = [1, 1]} : vector<8x64xf32> to vector<1x16xf32>
    %69 = vector.broadcast %68 : vector<1x16xf32> to vector<8x16xf32>
    %70 = arith.addf %67, %69 : vector<8x16xf32>
    %71 = tpu.iota {dimensions = array<i32: 1>} : vector<8x16xi32>
    %c8_i32 = arith.constant 8 : i32
    %72 = vector.broadcast %c8_i32 : i32 to vector<8x16xi32>
    %73 = arith.cmpi slt, %71, %72 : vector<8x16xi32>
    %74 = math.exp %70 : vector<8x16xf32>
    %75 = arith.select %73, %70, %74 : vector<8x16xi1>, vector<8x16xf32>
    %c0_21 = arith.constant 0 : index
    %c0_22 = arith.constant 0 : index
    %76 = vector.load %arg3[%c0_21, %c0_22] : memref<8x16xf32, #tpu.memory_space<vmem>>, vector<8x16xf32>
    tpu.vector_store %arg3[%c0_21, %c0_22], %75 {strides = array<i32>} : memref<8x16xf32, #tpu.memory_space<vmem>>, vector<8x16xf32>,
    return
  }
}

</mosaic_0001>

<bundles_post_ra>
// kernel: a_call__.1
= control target key start
LH: loop header
LB: loop body
LE: loop exit
PB: predicated region body
PF: predicated region fallthrough
CT: control target
= control target key end

     0   :  { %v415_v0 = vmov 0.0   ;;  %vm416_vm0 = vmmov 0   ;;  %vm34_vm1 = vcmask 130048   ;;  %v30_v12 = vlaneseq  ;;  %s533_s1 = inlined_call_operand.vmem [shape: f32[112,64], index: 1, kind: input, shape index: {}]   ;;  %s534_s0 = inlined_call_operand.vmem [shape: f32[8,16], index: 0, kind: input, shape index: {}]   ;;  %s535_s2 = inlined_call_operand.vmem [shape: f32[8,64], index: 2, kind: input, shape index: {}]   ;;  %s536_s3 = inlined_call_operand.vmem [shape: f32[8,16], index: 3, kind: output, shape index: {}]  }
   0x1   :  { %366 = vmatprep.subr.mxu0 %v415_v0  ;;  %v17_v1 = vld [vmem:[%s533_s1 + $0x8] sm:$0xff]  ;;  %v16_v2 = vld [vmem:[%s533_s1] sm:$0xff]  ;;  %370 = vmatprep.mubr.msk.f32.mxu0 %vm416_vm0, %v415_v0  ;;  %v23_v6 = vld [vmem:[%s533_s1 + $0x38] sm:$0xff]  ;;  %vm109_vm2 = vcmask 523264   ;;  %vm223_vm3 = vcmask 261120  }
   0x2   :  { %367 = vmatpush3.msra.mxu0 %v17_v1  ;;  %v14_v3 = vld [vmem:[%s534_s0] sm:$0xff]  ;;  %373 = vmatprep.subr.mxu1 %v415_v0  ;;  %v25_v4 = vld [vmem:[%s533_s1 + $0x48] sm:$0xff]  ;;  %v22_v7 = vld [vmem:[%s533_s1 + $0x30] sm:$0xff]  ;;  %v486_v13 = vshrl.u32 %v30_v12, 7 }
   0x3   :  { %368 = vmatprep.subr.mxu0 %v415_v0  ;;  %389 = vmatprep.mubr.msk.f32.mxu1 %vm416_vm0, %v415_v0  ;;  %v24_v5 = vld [vmem:[%s533_s1 + $0x40] sm:$0xff]  ;;  %v21_v8 = vld [vmem:[%s533_s1 + $0x28] sm:$0xff]  ;;  %v19_v10 = vld [vmem:[%s533_s1 + $0x18] sm:$0xff] }
   0x4   :  { %369 = vmatpush3.msra.mxu0 %v16_v2  ;;  %374 = vmatpush3.msra.mxu1 %v25_v4  ;;  %v20_v9 = vld [vmem:[%s533_s1 + $0x20] sm:$0xff]  ;;  %v18_v11 = vld [vmem:[%s533_s1 + $0x10] sm:$0xff]  ;;  %v32_v14 = vsub.s32 0, %v486_v13  ;;  %v137_v42 = vsub.s32 1, %v486_v13  ;;  %v142_v43 = vsub.s32 2, %v486_v13  ;;  %v29_v51 = vld [vmem:[%s533_s1 + $0x68] sm:$0xff] }
   0x5   :  { %371 = vmatmul.mubr.msk.f32.vlgmr.msra.gmra.mxu0 %vm34_vm1, %v14_v3  ;;  %392 = vmatprep.subr.mxu0 %v415_v0  ;;  %v492_v15 = vld [vmem:[%s535_s2] sm:$0xff]  ;;  %v27_v53 = vld [vmem:[%s533_s1 + $0x58] sm:$0xff]  ;;  %v26_v54 = vld [vmem:[%s533_s1 + $0x50] sm:$0xff]  ;;  %v147_v55 = vsub.s32 3, %v486_v13 }
   0x6   :  { %400 = vmatprep.mubr.msk.f32.mxu0 %vm416_vm0, %v415_v0  ;;  %375 = vmatprep.subr.mxu1 %v415_v0  ;;  %v33_v16 = vrot.slane %v492_v15, %v32_v14  ;;  %v138_v45 = vrot.slane %v492_v15, %v137_v42  ;;  %v143_v48 = vrot.slane %v492_v15, %v142_v43  ;;  %v28_v52 = vld [vmem:[%s533_s1 + $0x60] sm:$0xff] }
   0x7   :  { %376 = vmatpush3.msra.mxu1 %v24_v5  ;;  %393 = vmatpush3.msra.mxu0 %v29_v51  ;;  %v148_v56 = vrot.slane %v492_v15, %v147_v55 }
   0x8   :  { %377 = vmatprep.subr.mxu1 %v415_v0  ;;  %394 = vmatprep.subr.mxu0 %v415_v0 }
   0x9   :  { %378 = vmatpush3.msra.mxu1 %v23_v6  ;;  %395 = vmatpush3.msra.mxu0 %v28_v52 }
   0xa   :  { %379 = vmatprep.subr.mxu1 %v415_v0  ;;  %396 = vmatprep.subr.mxu0 %v415_v0 }
   0xb   :  { %380 = vmatpush3.msra.mxu1 %v22_v7  ;;  %397 = vmatpush3.msra.mxu0 %v27_v53 }
   0xc   :  { %381 = vmatprep.subr.mxu1 %v415_v0  ;;  %398 = vmatprep.subr.mxu0 %v415_v0 }
   0xd   :  { %382 = vmatpush3.msra.mxu1 %v21_v8  ;;  %399 = vmatpush3.msra.mxu0 %v26_v54 }
   0xe   :  { %383 = vmatprep.subr.mxu1 %v415_v0 }
   0xf   :  { %384 = vmatpush3.msra.mxu1 %v20_v9 }
  0x10   :  { %385 = vmatprep.subr.mxu1 %v415_v0 }
  0x11   :  { %386 = vmatpush3.msra.mxu1 %v19_v10 }
  0x12   :  { %387 = vmatprep.subr.mxu1 %v415_v0 }
  0x13   :  { %388 = vmatpush3.msra.mxu1 %v18_v11 }
  0xc5   :  { %v104_v17 = vpop.f32.mrf.mxu0 }
  0xc6   :  { %v105_v18 = vadd.f32 %v104_v17, %v33_v16 }
  0xc7   :  { %v372_v19 = vpop.f32.mrf.mxu0 }
  0xc8   :  { %405 = vtanh.f32 %v105_v18 }
  0xd5   :  { %v406_v20 = vpop.eup %405 }
  0xd6   :  { %v110_v21 = vsel %vm109_vm2, %v406_v20, 0.0  ;;  %v119_v22 = vmul.f32 %v406_v20, %v406_v20 }
  0xd7   :  { %v111_v23 = vrot.slane %v110_v21, 4 }
  0xd8   :  { %v120_v24 = vsel %vm109_vm2, %v119_v22, 0.0  ;;  %v255_v22 = vsub.s32 5, %v486_v13 }
  0xd9   :  { %v112_v25 = vadd.f32 %v111_v23, %v110_v21  ;;  %v121_v26 = vrot.slane %v120_v24, 4  ;;  %v250_v21 = vsub.s32 4, %v486_v13 }
  0xdb   :  { %v113_v27 = vrot.slane %v112_v25, 2  ;;  %v122_v28 = vadd.f32 %v121_v26, %v120_v24  ;;  %v251_v24 = vrot.slane %v492_v15, %v250_v21 }
  0xdd   :  { %v114_v29 = vadd.f32 %v113_v27, %v112_v25  ;;  %v123_v30 = vrot.slane %v122_v28, 2  ;;  %v256_v27 = vrot.slane %v492_v15, %v255_v22 }
  0xdf   :  { %v115_v31 = vrot.slane %v114_v29, 1  ;;  %v124_v32 = vadd.f32 %v123_v30, %v122_v28  ;;  %v260_v30 = vsub.s32 6, %v486_v13 }
  0xe1   :  { %v116_v33 = vadd.f32 %v115_v31, %v114_v29  ;;  %v125_v34 = vrot.slane %v124_v32, 1  ;;  %v261_v31 = vrot.slane %v492_v15, %v260_v30 }
  0xe3   :  { %v118_v35 = vmul.f32 0.125, %v116_v33  ;;  %v126_v36 = vadd.f32 %v125_v34, %v124_v32 }
  0xe5   :  { %v127_v37 = vmul.f32 0.125, %v126_v36  ;;  %v128_v38 = vmul.f32 %v118_v35, %v118_v35  ;;  %v131_v44 = vsub.f32 %v406_v20, %v118_v35  ;;  %v336_v36 = vand.u32 127, %v30_v12 }
  0xe7   :  { %v129_v39 = vsub.f32 %v127_v37, %v128_v38  ;;  %vm337_vm4 = vcmp.lt.s32.totalorder %v336_v36, 8 }
  0xe9   :  { %v130_v40 = vmax.f32 %v129_v39, 0.0 }
  0xeb   :  { %v132_v41 = vadd.f32 1e-05, %v130_v40 }
  0xed   :  { %407 = vrsqrt.f32 %v132_v41 }
  0xfa   :  { %v408_v46 = vpop.eup %407 }
  0xfb   :  { %v134_v47 = vmul.f32 %v408_v46, %v131_v44 }
  0xfd   :  { %v139_v49 = vmul.f32 %v138_v45, %v134_v47 }
  0xff   :  { %v144_v50 = vadd.f32 %v143_v48, %v139_v49 }
 0x101   :  { %390 = vmatmul.mubr.msk.f32.vlgmr.msra.gmra.mxu1 %vm109_vm2, %v144_v50 }
 0x1c1   :  { %v218_v57 = vpop.f32.mrf.mxu1 }
 0x1c2   :  { %v219_v58 = vadd.f32 %v218_v57, %v148_v56 }
 0x1c3   :  { %v391_v59 = vpop.f32.mrf.mxu1 }
 0x1c4   :  { %409 = vtanh.f32 %v219_v58 }
 0x1d1   :  { %v410_v60 = vpop.eup %409 }
 0x1d2   :  { %v224_v61 = vsel %vm223_vm3, %v410_v60, 0.0  ;;  %v232_v62 = vmul.f32 %v410_v60, %v410_v60 }
 0x1d3   :  { %v225_v63 = vrot.slane %v224_v61, 4 }
 0x1d4   :  { %v233_v1 = vsel %vm223_vm3, %v232_v62, 0.0 }
 0x1d5   :  { %v226_v2 = vadd.f32 %v225_v63, %v224_v61  ;;  %v234_v3 = vrot.slane %v233_v1, 4 }
 0x1d7   :  { %v227_v0 = vrot.slane %v226_v2, 2  ;;  %v235_v4 = vadd.f32 %v234_v3, %v233_v1 }
 0x1d9   :  { %v228_v5 = vadd.f32 %v227_v0, %v226_v2  ;;  %v236_v6 = vrot.slane %v235_v4, 2 }
 0x1db   :  { %v229_v7 = vrot.slane %v228_v5, 1  ;;  %v237_v8 = vadd.f32 %v236_v6, %v235_v4 }
 0x1dd   :  { %v230_v9 = vadd.f32 %v229_v7, %v228_v5  ;;  %v238_v10 = vrot.slane %v237_v8, 1 }
 0x1df   :  { %v231_v11 = vmul.f32 0.125, %v230_v9  ;;  %v239_v14 = vadd.f32 %v238_v10, %v237_v8 }
 0x1e1   :  { %v240_v16 = vmul.f32 0.125, %v239_v14  ;;  %v241_v17 = vmul.f32 %v231_v11, %v231_v11  ;;  %v244_v23 = vsub.f32 %v410_v60, %v231_v11 }
 0x1e3   :  { %v242_v18 = vsub.f32 %v240_v16, %v241_v17 }
 0x1e5   :  { %v243_v19 = vmax.f32 %v242_v18, 0.0 }
 0x1e7   :  { %v245_v20 = vadd.f32 1e-05, %v243_v19 }
 0x1e9   :  { %411 = vrsqrt.f32 %v245_v20 }
 0x1f6   :  { %v412_v25 = vpop.eup %411 }
 0x1f7   :  { %v247_v26 = vmul.f32 %v412_v25, %v244_v23 }
 0x1f9   :  { %v252_v28 = vmul.f32 %v251_v24, %v247_v26 }
 0x1fb   :  { %v257_v29 = vadd.f32 %v256_v27, %v252_v28 }
 0x1fd   :  { %401 = vmatmul.mubr.msk.f32.vlgmr.msra.gmra.mxu0 %vm223_vm3, %v257_v29 }
 0x2bd   :  { %v331_v32 = vpop.f32.mrf.mxu0 }
 0x2be   :  { %v332_v33 = vadd.f32 %v331_v32, %v261_v31 }
 0x2bf   :  { %v402_v34 = vpop.f32.mrf.mxu0 }
 0x2c0   :  { %v338_v35 = vmul.f32 1.442695, %v332_v33 }
 0x2c2   :  { %413 = vpow2.f32 %v338_v35 }
 0x2cf   :  { %v414_v37 = vpop.eup %413 }
 0x2d0   :  { %v340_v38 = vsel %vm337_vm4, %v332_v33, %v414_v37 }
 0x2d1   :  { %341 = vst.msk [vmem:[%s536_s3] sm:$0xff] %vm34_vm1, %v340_v38 }

</bundles_post_ra>
